<compile_context>
chip_gen: v7x
topology: tpu7x:2x2x1
jax: 0.10.0
libtpu: 0.0.40
codegen_flags: <defaults>
</compile_context>

<pallas_src>
import functools
import numpy as np
import jax
import jax.numpy as jnp
from jax import lax
from jax.experimental import pallas as pl
from jax.experimental.pallas import tpu as pltpu

_SQRT2 = float(np.sqrt(2.0))


def _round_up(a, b):
    return (a + b - 1) // b * b


def _sublane(dtype):
    # f32 -> 8, bf16 -> 16, int8/fp8 -> 32 (sub-32-bit dtypes pack along sublanes).
    return 8 * max(1, 4 // jnp.dtype(dtype).itemsize)


def _pick_tile(dim, max_tile, align):
    """Pick a tile for `dim`. Returns (tile, padded_dim).

    Preference order: (a) full-dim block (no alignment constraint, no pad),
    (b) an `align`-multiple tile that divides dim exactly (no pad),
    (c) padding dim up to a multiple of the largest aligned tile."""
    if dim <= max_tile:
        return dim, dim
    t = (max_tile // align) * align
    while t >= align:
        if dim % t == 0:
            return t, dim
        t -= align
    t = (max_tile // align) * align
    return t, _round_up(dim, t)


def _vmem_footprint(tm, tn, tk, itemsize, has_bias):
    # Double-buffered input/output tiles + resident f32 accumulator (+ bias).
    buf = 2 * (tm * tk + tn * tk + tm * tn) * itemsize
    buf += tm * tn * 4
    if has_bias:
        buf += 2 * tn * itemsize
    return buf


def _fc_kernel(*refs, weight_gain, bias_gain, activation, has_bias):
    if has_bias:
        x_ref, w_ref, b_ref, o_ref, acc_ref = refs
    else:
        x_ref, w_ref, o_ref, acc_ref = refs
        b_ref = None
    # x_ref: (tm, tk)  w_ref: (tn, tk)  b_ref: (1, tn)  o_ref/acc_ref: (tm, tn)
    k = pl.program_id(2)

    @pl.when(k == 0)
    def _init():
        acc_ref[...] = jnp.zeros_like(acc_ref)

    # Contract the last dims of both operands (weight kept in [N, K] layout);
    # native MXU transposed-RHS matmul, f32 accumulation.
    acc_ref[...] += lax.dot_general(
        x_ref[...], w_ref[...],
        dimension_numbers=(((1,), (1,)), ((), ())),
        preferred_element_type=jnp.float32)

    @pl.when(k == pl.num_programs(2) - 1)
    def _finalize():
        acc = acc_ref[...]
        # Scale the small (tm, tn) accumulator once, not the weight stream.
        if weight_gain != 1.0:
            acc = acc * weight_gain
        if has_bias:
            b = b_ref[...].astype(jnp.float32)
            if bias_gain != 1.0:
                b = b * bias_gain
            acc = acc + b
        if activation == "lrelu":
            acc = jnp.where(acc >= 0, acc, 0.2 * acc) * _SQRT2
        elif activation == "relu":
            acc = jnp.maximum(acc, 0.0) * _SQRT2
        # 'linear': nothing
        o_ref[...] = acc.astype(o_ref.dtype)


def fully_connected_pallas(x, weight, bias=None, *, lr_multiplier=1.0,
                           activation="linear", tm=512, tn=512, tk=1024):
    """x: [M, K]; weight: [N, K] (PyTorch layout); bias: [N] or None -> [M, N]."""
    M, K = x.shape
    N, K2 = weight.shape
    assert K == K2, "weight must be [out_features, in_features]"
    if activation not in ("linear", "relu", "lrelu"):
        # TODO(synk): other bias_act activations (tanh/sigmoid/elu/...) not ported.
        raise ValueError(f"unsupported activation: {activation}")

    dtype = x.dtype
    itemsize = jnp.dtype(dtype).itemsize
    sub = _sublane(dtype)
    weight_gain = float(lr_multiplier) / float(np.sqrt(K))   # uses original K
    bias_gain = float(lr_multiplier)
    has_bias = bias is not None

    # ---- Generation-aware VMEM budget (v7x: 64 MiB/TC, v5e/v6e: 128 MiB).
    try:
        info = pltpu.get_tpu_info()
        vmem_cap = int(getattr(info, "vmem_capacity_bytes", 64 * 1024 * 1024))
    except Exception:
        vmem_cap = 64 * 1024 * 1024
    budget = (vmem_cap * 3) // 4

    max_tm = max(sub, _round_up(min(tm, 4096), sub))
    max_tn = max(128, _round_up(min(tn, 4096), 128))
    max_tk = max(128, _round_up(min(tk, 8192), 128))
    while _vmem_footprint(min(max_tm, M), min(max_tn, N), min(max_tk, K),
                          itemsize, has_bias) > budget:
        if max_tk > 256:
            max_tk //= 2
        elif max_tn > 256:
            max_tn //= 2
        elif max_tm > 64:
            max_tm //= 2
        else:
            break

    tm, Mp = _pick_tile(M, max_tm, sub)     # second-last dims: sublane aligned
    tn, Np = _pick_tile(N, max_tn, 128)     # output lane dim: 128 aligned
    tk, Kp = _pick_tile(K, max_tk, 128)     # contraction lane dim: 128 aligned

    # v7x megacore: make sure the parallel (i, j) grid has >= 2 blocks.
    if (Mp // tm) * (Np // tn) < 2:
        if tn == Np and Np >= 256 and Np % 256 == 0:
            tn = Np // 2
        elif tm == Mp and Mp >= 2 * sub and Mp % (2 * sub) == 0:
            tm = Mp // 2

    w = jnp.asarray(weight)
    if w.dtype != dtype:
        w = w.astype(dtype)

    # Padding only as a last resort (tile picker prefers exact divisors).
    xp = x if (Mp == M and Kp == K) else jnp.pad(x, ((0, Mp - M), (0, Kp - K)))
    wp = w if (Np == N and Kp == K) else jnp.pad(w, ((0, Np - N), (0, Kp - K)))

    operands = [xp, wp]
    in_specs = [
        pl.BlockSpec((tm, tk), lambda i, j, k: (i, k)),   # x tile
        pl.BlockSpec((tn, tk), lambda i, j, k: (j, k)),   # weight tile ([N, K])
    ]
    if has_bias:
        b2d = jnp.asarray(bias).astype(dtype).reshape(1, N)
        bp = b2d if Np == N else jnp.pad(b2d, ((0, 0), (0, Np - N)))
        operands.append(bp)
        in_specs.append(pl.BlockSpec((1, tn), lambda i, j, k: (0, j)))

    grid = (Mp // tm, Np // tn, Kp // tk)

    kernel = functools.partial(
        _fc_kernel, weight_gain=weight_gain, bias_gain=bias_gain,
        activation=activation, has_bias=has_bias)

    footprint = _vmem_footprint(tm, tn, tk, itemsize, has_bias)
    vmem_limit = int(min(budget, max(2 * footprint, 32 * 1024 * 1024)))

    cost = pl.CostEstimate(
        flops=2 * M * N * K,
        transcendentals=0,
        bytes_accessed=(M * K + N * K + (N if has_bias else 0) + M * N) * itemsize)

    out = pl.pallas_call(
        kernel,
        out_shape=jax.ShapeDtypeStruct((Mp, Np), dtype),
        grid_spec=pltpu.PrefetchScalarGridSpec(
            num_scalar_prefetch=0,
            grid=grid,
            in_specs=in_specs,
            out_specs=pl.BlockSpec((tm, tn), lambda i, j, k: (i, j)),
            scratch_shapes=[pltpu.VMEM((tm, tn), jnp.float32)],
        ),
        compiler_params=pltpu.CompilerParams(
            dimension_semantics=("parallel", "parallel", "arbitrary"),
            vmem_limit_bytes=vmem_limit,
        ),
        cost_estimate=cost,
    )(*operands)

    if Mp != M or Np != N:
        out = out[:M, :N]
    return out


def _reference(x, weight, bias, *, lr_multiplier=1.0, activation="linear"):
    K = x.shape[1]
    w = weight.astype(jnp.float32) * (lr_multiplier / np.sqrt(K))
    y = x.astype(jnp.float32) @ w.T
    if bias is not None:
        y = y + (bias.astype(jnp.float32) * lr_multiplier)[None, :]
    if activation == "lrelu":
        y = jnp.where(y >= 0, y, 0.2 * y) * _SQRT2
    elif activation == "relu":
        y = jnp.maximum(y, 0.0) * _SQRT2
    return y


if __name__ == "__main__":
    key = jax.random.PRNGKey(0)
    k1, k2, k3, k4, k5, k6 = jax.random.split(key, 6)

    # 1) StyleGAN mapping-style layer: lrelu + lr_multiplier, f32.
    batch, in_f, out_f = 16, 32, 64
    lrm = 0.01
    x = jax.random.normal(k1, (batch, in_f), dtype=jnp.float32)
    w = jax.random.normal(k2, (out_f, in_f), dtype=jnp.float32) / lrm
    b = jnp.zeros((out_f,), dtype=jnp.float32)
    y = jax.block_until_ready(
        fully_connected_pallas(x, w, b, lr_multiplier=lrm, activation="lrelu"))
    np.testing.assert_allclose(
        np.asarray(y),
        np.asarray(_reference(x, w, b, lr_multiplier=lrm, activation="lrelu")),
        rtol=1e-4, atol=1e-5)

    # 2) Linear + bias (the torch.addmm path), f32.
    y_lin = jax.block_until_ready(
        fully_connected_pallas(x, w, b, lr_multiplier=1.0, activation="linear"))
    np.testing.assert_allclose(
        np.asarray(y_lin),
        np.asarray(_reference(x, w, b, lr_multiplier=1.0, activation="linear")),
        rtol=1e-4, atol=1e-5)

    # 3) Non-aligned shapes + multi-step K reduction (tk=128 -> 3 K steps).
    M2, K2d, N2 = 24, 384, 160
    x2 = jax.random.normal(k3, (M2, K2d), dtype=jnp.float32)
    w2 = jax.random.normal(k4, (N2, K2d), dtype=jnp.float32)
    b2 = jnp.linspace(-1.0, 1.0, N2, dtype=jnp.float32)
    y2 = jax.block_until_ready(
        fully_connected_pallas(x2, w2, b2, lr_multiplier=1.0,
                               activation="relu", tk=128))
    np.testing.assert_allclose(
        np.asarray(y2),
        np.asarray(_reference(x2, w2, b2, lr_multiplier=1.0, activation="relu")),
        rtol=1e-4, atol=1e-4)

    # 4) Bias-less path (3-ref kernel variant, no zero-bias stream).
    y3 = jax.block_until_ready(
        fully_connected_pallas(x2, w2, None, lr_multiplier=1.0, activation="linear"))
    np.testing.assert_allclose(
        np.asarray(y3),
        np.asarray(_reference(x2, w2, None, lr_multiplier=1.0, activation="linear")),
        rtol=1e-4, atol=1e-4)

    # 5) bf16 operands straight into the MXU (f32 accumulation + f32 epilogue).
    xb = jax.random.normal(k5, (16, 256), dtype=jnp.bfloat16)
    wb = jax.random.normal(k6, (128, 256), dtype=jnp.bfloat16)
    bb = jnp.linspace(-0.5, 0.5, 128, dtype=jnp.bfloat16)
    yb = jax.block_until_ready(
        fully_connected_pallas(xb, wb, bb, lr_multiplier=1.0, activation="lrelu"))
    yb_ref = _reference(xb.astype(jnp.float32), wb.astype(jnp.float32),
                        bb.astype(jnp.float32), lr_multiplier=1.0, activation="lrelu")
    np.testing.assert_allclose(np.asarray(yb, dtype=np.float32), np.asarray(yb_ref),
                               rtol=5e-2, atol=5e-2)

    print("KERNEL_OK")
</pallas_src>

<mosaic_0001>
module attributes {stable_mosaic.version = 11 : i64} {
  func.func @_fc_kernel(%arg0: i32, %arg1: i32, %arg2: i32, %arg3: memref<8x32xf32, #tpu.memory_space<vmem>>, %arg4: memref<64x32xf32, #tpu.memory_space<vmem>>, %arg5: memref<1x64xf32, #tpu.memory_space<vmem>>, %arg6: memref<8x64xf32, #tpu.memory_space<vmem>>, %arg7: memref<8x64xf32, #tpu.memory_space<vmem>>) attributes {dimension_semantics = [#tpu.dimension_semantics<parallel>, #tpu.dimension_semantics<parallel>, #tpu.dimension_semantics<arbitrary>], iteration_bounds = array<i64: 2, 1, 1>, scalar_prefetch = 0 : i64, scratch_operands = 1 : i64, tpu.core_type = #tpu.core_type<tc>, window_params = [{transform_indices = @transform_0, window_bounds = array<i64: 8, 32>}, {transform_indices = @transform_1, window_bounds = array<i64: 64, 32>}, {transform_indices = @transform_2, window_bounds = array<i64: 1, 64>}, {transform_indices = @transform_3, window_bounds = array<i64: 8, 64>}]} {
    %c0_i32 = arith.constant 0 : i32
    %0 = arith.cmpi eq, %arg2, %c0_i32 : i32
    %1 = arith.extui %0 : i1 to i32
    %c0_i32_0 = arith.constant 0 : i32
    %2 = arith.cmpi ne, %1, %c0_i32_0 : i32
    scf.if %2 {
      %cst_10 = arith.constant 0.000000e+00 : f32
      %12 = vector.broadcast %cst_10 : f32 to vector<8x64xf32>
      %c0_11 = arith.constant 0 : index
      %c0_12 = arith.constant 0 : index
      %13 = vector.load %arg7[%c0_11, %c0_12] : memref<8x64xf32, #tpu.memory_space<vmem>>, vector<8x64xf32>
      tpu.vector_store %arg7[%c0_11, %c0_12], %12 {strides = array<i32>} : memref<8x64xf32, #tpu.memory_space<vmem>>, vector<8x64xf32>,
    } else {
    }
    %c0 = arith.constant 0 : index
    %c0_1 = arith.constant 0 : index
    %3 = vector.load %arg7[%c0, %c0_1] : memref<8x64xf32, #tpu.memory_space<vmem>>, vector<8x64xf32>
    %c0_2 = arith.constant 0 : index
    %c0_3 = arith.constant 0 : index
    %4 = vector.load %arg3[%c0_2, %c0_3] : memref<8x32xf32, #tpu.memory_space<vmem>>, vector<8x32xf32>
    %c0_4 = arith.constant 0 : index
    %c0_5 = arith.constant 0 : index
    %5 = vector.load %arg4[%c0_4, %c0_5] : memref<64x32xf32, #tpu.memory_space<vmem>>, vector<64x32xf32>
    %cst = arith.constant dense<0.000000e+00> : vector<8x64xf32>
    %6 = tpu.matmul %4, %5, %cst {dimension_numbers = #tpu.dot_dimension_numbers<[1], [1], [0], [0], [0, 0, 1, 0], [], []>} : vector<8x32xf32>, vector<64x32xf32>, vector<8x64xf32> -> vector<8x64xf32>
    %7 = arith.addf %3, %6 : vector<8x64xf32>
    %c0_6 = arith.constant 0 : index
    %c0_7 = arith.constant 0 : index
    %8 = vector.load %arg7[%c0_6, %c0_7] : memref<8x64xf32, #tpu.memory_space<vmem>>, vector<8x64xf32>
    tpu.vector_store %arg7[%c0_6, %c0_7], %7 {strides = array<i32>} : memref<8x64xf32, #tpu.memory_space<vmem>>, vector<8x64xf32>,
    %c0_i32_8 = arith.constant 0 : i32
    %9 = arith.cmpi eq, %arg2, %c0_i32_8 : i32
    %10 = arith.extui %9 : i1 to i32
    %c0_i32_9 = arith.constant 0 : i32
    %11 = arith.cmpi ne, %10, %c0_i32_9 : i32
    scf.if %11 {
      %c0_10 = arith.constant 0 : index
      %c0_11 = arith.constant 0 : index
      %12 = vector.load %arg7[%c0_10, %c0_11] : memref<8x64xf32, #tpu.memory_space<vmem>>, vector<8x64xf32>
      %cst_12 = arith.constant 0.00176776689 : f32
      %13 = vector.broadcast %cst_12 : f32 to vector<8x64xf32>
      %14 = arith.mulf %12, %13 : vector<8x64xf32>
      %c0_13 = arith.constant 0 : index
      %c0_14 = arith.constant 0 : index
      %15 = vector.load %arg5[%c0_13, %c0_14] : memref<1x64xf32, #tpu.memory_space<vmem>>, vector<1x64xf32>
      %cst_15 = arith.constant 0.00999999977 : f32
      %16 = vector.broadcast %cst_15 : f32 to vector<1x64xf32>
      %17 = arith.mulf %15, %16 : vector<1x64xf32>
      %18 = vector.broadcast %17 : vector<1x64xf32> to vector<8x64xf32>
      %19 = arith.addf %14, %18 : vector<8x64xf32>
      %cst_16 = arith.constant 0.000000e+00 : f32
      %20 = vector.broadcast %cst_16 : f32 to vector<8x64xf32>
      %21 = arith.cmpf oge, %19, %20 : vector<8x64xf32>
      %cst_17 = arith.constant 2.000000e-01 : f32
      %22 = vector.broadcast %cst_17 : f32 to vector<8x64xf32>
      %23 = arith.mulf %22, %19 : vector<8x64xf32>
      %24 = arith.select %21, %19, %23 : vector<8x64xi1>, vector<8x64xf32>
      %cst_18 = arith.constant 1.41421354 : f32
      %25 = vector.broadcast %cst_18 : f32 to vector<8x64xf32>
      %26 = arith.mulf %24, %25 : vector<8x64xf32>
      %c0_19 = arith.constant 0 : index
      %c0_20 = arith.constant 0 : index
      %27 = vector.load %arg6[%c0_19, %c0_20] : memref<8x64xf32, #tpu.memory_space<vmem>>, vector<8x64xf32>
      tpu.vector_store %arg6[%c0_19, %c0_20], %26 {strides = array<i32>} : memref<8x64xf32, #tpu.memory_space<vmem>>, vector<8x64xf32>,
    } else {
    }
    return
  }
  func.func @transform_0(%arg0: i32, %arg1: i32, %arg2: i32) -> (i32, i32) {
    %c0_i32 = arith.constant 0 : i32
    return %arg0, %arg2 : i32, i32
  }
  func.func @transform_1(%arg0: i32, %arg1: i32, %arg2: i32) -> (i32, i32) {
    %c0_i32 = arith.constant 0 : i32
    return %arg1, %arg2 : i32, i32
  }
  func.func @transform_2(%arg0: i32, %arg1: i32, %arg2: i32) -> (i32, i32) {
    %c0_i32 = arith.constant 0 : i32
    %c0_i32_0 = arith.constant 0 : i32
    return %c0_i32, %arg1 : i32, i32
  }
  func.func @transform_3(%arg0: i32, %arg1: i32, %arg2: i32) -> (i32, i32) {
    %c0_i32 = arith.constant 0 : i32
    return %arg0, %arg1 : i32, i32
  }
}

</mosaic_0001>

<bundles_post_ra>
// kernel: tpu_custom_call.1
= control target key start
LH: loop header
LB: loop body
LE: loop exit
PB: predicated region body
PF: predicated region fallthrough
CT: control target
= control target key end

     0   :  { %8 = vsyncpa [#allocation4], 0  ;;  %s885_s0 = inlined_call_operand.vmem [shape: f32[16,32], index: 0, kind: input, shape index: {}]   ;;  %s886_s1 = inlined_call_operand.vmem [shape: f32[64,32], index: 1, kind: input, shape index: {}]   ;;  %s887_s2 = inlined_call_operand.vmem [shape: f32[1,64], index: 2, kind: input, shape index: {}]   ;;  %s888_s3 = inlined_call_operand.hbm [shape: f32[16,64], index: 3, kind: output, shape index: {}]  }
   0x1   :  { %10 = vsyncpa [#allocation4 + $0x1], 0  ;;  %s728_s12 = smov 0   ;;  %s730_s13 = smov 0  }
   0x2   :  { %s732_s14 = smov 0   ;;  %s734_s15 = smov 0  }
   0x3   :  { %s736_s16 = smov 0   ;;  %s738_s17 = smov 0  }
   0x4 LB: > { %s500_s18 = sadd.s32 4294967295, %s702_s17   ;;  %s501_s19 = sadd.s32 4294967294, %s702_s17   ;;  %s702_s17 = sphi %s738_s17, %s16_s17   ;;  %s698_s16 = sphi %s736_s16, %s897_s16   ;;  %s694_s15 = sphi %s734_s15, %s896_s15   ;;  %s690_s14 = sphi %s732_s14, %s895_s14   ;;  %s686_s13 = sphi %s730_s13, %s894_s13   ;;  %s682_s12 = sphi %s728_s12, %s893_s12  }
   0x5   : > { %s35_s20 = sadd.s32 1, %s698_s16  ;;  %s126_s21 = sadd.s32 1, %s690_s14 }
   0x6   : > { %p37_p0 = scmp.ge.s32.totalorder %s35_s20, 2  ;;  %p136_p1 = scmp.ne.s32.totalorder %s690_s14, %s686_s13 }
   0x7   : > { %p137_p2 = scmp.eq.s32.totalorder %s500_s18, 1  ;;  %p142_p3 = scmp.ne.s32.totalorder %s686_s13, %s682_s12 }
   0x8   : > { %s899_s20 = smov (%p37_p0, %s35_s20), 0  ;;  %p143_p5 = scmp.eq.s32.totalorder %s501_s19, 1 }
   0x9   : > { %p768_p4 = por %p137_p2, %p136_p1  ;;  %s121_s23 = ssub.s32 %s698_s16, %s899_s20 }
   0xa   : > { %p506_p6 = scmp.ge.s32.totalorder %s702_s17, 1  ;;  %p124_p7 = scmp.eq.s32.totalorder %s121_s23, 0 }
   0xb   : > { %p775_p8 = por %p143_p5, %p142_p3  ;;  %p189_p9 = scmp.lt.s32.totalorder %s702_s17, 3 }
   0xc   : > { %s781_s25 = scalar_select %p124_p7, %s690_s14, %s126_s21  }
   0xd   : > { %p190_p10 = pnand %p506_p6, %p189_p9 }
   0xe   : > { %v253_v0 = vld [vmem:[%s886_s1] sm:$0xff] (!%p190_p10)  ;;  %v254_v1 = vld [vmem:[%s886_s1 + $0x8] sm:$0xff] (!%p190_p10)  ;;  %vm261_vm0 = vcmask (!%p190_p10), 261120   ;;  %vm249_vm1 = vcmask (!%p190_p10), 523264   ;;  %v704_v2 = vmov (!%p190_p10), 0.0|0.0   ;;  %v705_v5 = vmov (!%p190_p10), 0.0  }
   0xf   : > { %193 = sbr.rel (%p190_p10) target bundleno = 293 (0x125), region = 32  ;;  %550 = vmatprep.subr.bf16.mxu0 (!%p190_p10), %v704_v2  ;;  %v551_v3 = vpack.c.bf16 (!%p190_p10), %v254_v1, %v253_v0  ;;  %vm791_vm2 = vmpackc.low (!%p190_p10), %vm261_vm0, %vm261_vm0  ;;  %250 = vst.msk [vmem:[#allocation2] sm:$0xff] (!%p190_p10), %vm249_vm1, %v705_v5  ;;  %vm706_vm3 = vmmov (!%p190_p10), 0   ;;  %v255_v6 = vld [vmem:[%s886_s1 + $0x10] sm:$0xff] (!%p190_p10)  ;;  %v256_v7 = vld [vmem:[%s886_s1 + $0x18] sm:$0xff] (!%p190_p10)  ;;  %p226_p11 = scmp.lt.s32.totalorder (!%p190_p10), %s694_s15, 1  ;;  %v370_v16 = vlaneseq (!%p190_p10) }
  0x10   : > { %547 = vmatprep.mubr.msk.f32.mxu0 (!%p190_p10), %vm706_vm3, %v705_v5  ;;  %v555_v8 = vpack.c.bf16 (!%p190_p10), %v256_v7, %v255_v6  ;;  %v257_v9 = vld [vmem:[%s886_s1 + $0x20] sm:$0xff] (!%p190_p10)  ;;  %v258_v10 = vld [vmem:[%s886_s1 + $0x28] sm:$0xff] (!%p190_p10)  ;;  %v259_v12 = vld [vmem:[%s886_s1 + $0x30] sm:$0xff] (!%p190_p10)  ;;  %s223_s5 = sand.u32 (!%p190_p10), 1, %s686_s13   ;;  %s519_s7 = sshll.u32 (!%p190_p10), %s694_s15, 7 }
  0x11   : > { %553 = vmatpush3.bf16.xpose.msk.msra.mxu0 (!%p190_p10), %vm791_vm2, %v551_v3  ;;  %v559_v11 = vpack.c.bf16 (!%p190_p10), %v258_v10, %v257_v9  ;;  %v260_v13 = vld [vmem:[%s886_s1 + $0x38] sm:$0xff] (!%p190_p10)  ;;  %v371_v21 = vshrl.u32 (!%p190_p10), %v370_v16, 7  ;;  %v367_v22 = vld [vmem:[%s887_s2] sm:$0x1] (!%p190_p10)  ;;  %s507_s6 = sshll.u32 (!%p190_p10), %s223_s5, 3  ;;  %s837_s18 = scalar_lea.hbm (!%p190_p10), %s888_s3, %s519_s7 }
  0x12   : > { %554 = vmatprep.subr.bf16.mxu0 (!%p190_p10), %v704_v2  ;;  %v563_v14 = vpack.c.bf16 (!%p190_p10), %v260_v13, %v259_v12  ;;  %v368_v23 = vmul.f32 (!%p190_p10), 0.01, %v367_v22  ;;  %s225_s8 = scalar_lea.vmem (!%p190_p10), [#allocation3], %s507_s6  ;;  %s382_s19 = scalar_lea.sflag (!%p190_p10), [#allocation4], %s223_s5 }
  0x13   : > { %v372_v24 = vsub.s32 (!%p190_p10), 0, %v371_v21  ;;  %s396_s9 = sshll.u32 (!%p190_p10), %s225_s8, 4  ;;  %s839_s9 = int_to_ptr.vmem [resolvable:$true] %s396_s9 }
  0x14   : > { %s624_s21 = scalar_lea.vmem (!%p190_p10), %s839_s9, 128 }
  0x15   : > { %v373_v25 = vrot.slane (!%p190_p10), %v368_v23, %v372_v24  ;;  %p625_p12 = scmp.ne.s32.totalorder (!%p190_p10), %s839_s9, %s624_s21 }
  0x16   : > { %s227_s23 = scalar_select %p226_p11, %s694_s15, 1  ;;  %v251_v17 = vld [vmem:[#allocation2] sm:$0xff] }
  0x17   : > { %p626_p13 = pnand %p625_p12, %p768_p4  ;;  %s707_s15 = smov [#allocation3]  }
  0x18   : > { %s508_s26 = sshll.u32 %s227_s23, 3  ;;  %s628_s23 = sshll.u32 %s707_s15, 4  ;;  %s629_s23 = int_to_ptr.vmem [resolvable:$false] %s628_s23 }
  0x19   : > { %557 = vmatpush3.bf16.xpose.msk.msra.mxu0 %vm791_vm2, %v555_v8  ;;  %s232_s29 = scalar_lea.vmem %s885_s0, %s508_s26  ;;  %p627_p0 = pneg %p626_p13 }
  0x1a   : > { %558 = vmatprep.subr.bf16.mxu0 %v704_v2  ;;  %v252_v15 = vld [vmem:[%s232_s29] sm:$0xff]  ;;  %s630_s26 = scalar_lea.vmem %s629_s23, 256  ;;  %p631_p1 = scmp.lt.s32.totalorder %s839_s9, %s629_s23 }
  0x1b   : > { %p632_p2 = scmp.lt.s32.totalorder %s630_s26, %s624_s21 }
  0x1d   : > { %p633_p3 = por %p632_p2, %p631_p1 }
  0x1f   : > { %p634_p5 = pnand %p633_p3, %p627_p0 }
  0x21   : > { %561 = vmatpush3.bf16.xpose.msk.msra.mxu0 %vm791_vm2, %v559_v11 }
  0x22   : > { %562 = vmatprep.subr.bf16.mxu0 %v704_v2 }
  0x29   : > { %565 = vmatpush3.bf16.xpose.msk.msra.mxu0 %vm791_vm2, %v563_v14 }
  0x30   : > { %548 = vmatmul.mubr.msk.f32.vlgmr.msra.gmra.mrb[0].mxu0 %vm261_vm0, %v252_v15 }
 0x103   : > { %v355_v18 = vpop.f32.mrb[0].mxu0 }
 0x104   : > { %v359_v19 = vadd.f32 %v355_v18, %v251_v17  ;;  %v549_v20 = vpop.f32.mrb[1].mxu0 }
 0x106   : > { %361 = vst.msk [vmem:[#allocation2] sm:$0xff] %vm249_vm1, %v359_v19 }
 0x10d   : > { %v365_v26 = vld [vmem:[#allocation2] sm:$0xff] }
 0x10e   : > { %v366_v27 = vmul.f32 0.0017677669, %v365_v26 }
 0x110   : > { %v375_v28 = vadd.f32 %v373_v25, %v366_v27 }
 0x112   : > { %vm376_vm4 = vcmp.ge.f32.partialorder %v375_v28, 0.0  ;;  %v377_v29 = vmul.f32 0.2, %v375_v28 }
 0x114   : > { %v378_v30 = vsel %vm376_vm4, %v375_v28, %v377_v29 }
 0x115   : > { %v379_v31 = vmul.f32 1.4142135, %v378_v30 }
 0x117   : > { %380 = vst.msk [vmem:[%s225_s8] sm:$0xff] %vm249_vm1, %v379_v31 }
 0x118   : > { %637 = shalt.err (!%p634_p5)
}
 0x119   : > { %s638_s27 = scalar_lea.hbm %s837_s18, 128  ;;  %s642_s30 = scalar_lea.hbm %s888_s3, 256 }
 0x11a   : > { %p639_p6 = scmp.ne.s32.totalorder %s837_s18, %s638_s27  ;;  %p643_p10 = scmp.lt.u32.totalorder %s837_s18, %s888_s3 }
 0x11b   : > { %p644_p11 = scmp.lt.u32.totalorder %s642_s30, %s638_s27  ;;  %p646_p13 = scmp.lt.u32.totalorder %s638_s27, %s837_s18 }
 0x11c   : > { %p640_p7 = pnand %p639_p6, %p768_p4 }
 0x11d   : > { %p645_p12 = por %p644_p11, %p643_p10 }
 0x11e   : > { %p641_p9 = pneg %p640_p7 }
 0x11f   : > { %p647_p0 = por %p646_p13, %p645_p12 }
 0x121   : > { %p648_p1 = pnand %p647_p0, %p641_p9 }
 0x123   : > { %651 = shalt.err (!%p648_p1)
}
 0x124   : > { %566 = dma.vmem_to_hbm [thread:$0]  (%p768_p4), %s839_s9, 128, %s837_s18, %s382_s19  }
 0x125 PF: > { %p572_p2 = scmp.ge.s32.totalorder %s702_s17, 2  ;;  %s408_s6 = sand.u32 1, %s682_s12  }
 0x126   : > { %s409_s7 = scalar_lea.sflag [#allocation4], %s408_s6 }
 0x127   : > { %p569_p3 = pnand %p572_p2, %p775_p8 }
 0x129   : > { %677 = dma.done.wait (!%p569_p3), %s409_s7, 128  }
 0x12a   : > { %679 = vsyncadd (!%p569_p3), %s409_s7, 4294967168  ;;  %s16_s17 = sadd.s32 1, %s702_s17   ;;  %s893_s12 = smov %s686_s13 }
 0x12b   : > { %p13_p5 = scmp.ge.s32.totalorder %s16_s17, 4   ;;  %s894_s13 = smov %s690_s14 }
 0x12c   : > { %s895_s14 = smov %s781_s25  ;;  %s896_s15 = smov %s698_s16 }
 0x12d   : > { %s897_s16 = smov %s899_s20  ;;  %15 = sbr.rel (!%p13_p5) target bundleno = 4 (0x4), region = 81 }
 0x134   :  { %414 = vsyncpa [#allocation4], 1 }
 0x135   :  { %416 = vsyncpa [#allocation4 + $0x1], 1 }

</bundles_post_ra>
